<compile_context>
chip_gen: v7x
topology: tpu7x:2x2x1
jax: 0.10.0
libtpu: 0.0.40
codegen_flags: <defaults>
</compile_context>

<pallas_src>
from functools import partial

import jax
import jax.numpy as jnp
from jax.experimental import pallas as pl
from jax.experimental.pallas import tpu as pltpu


# ----------------------------------------------------------------------------
# Pass 1: adaptive average pooling (mean over H*W), tiled streaming reduction.
# ----------------------------------------------------------------------------
def _pool_kernel(x_ref, o_ref, acc_ref, *, inv_hw):
    # x_ref:  (1, C, T_hw)   one spatial tile of one sample
    # o_ref:  (1, C, 1)      pooled mean (written on the last tile)
    # acc_ref:(C, 1) f32     running spatial sum (accumulate in f32 even for bf16 x)
    t = pl.program_id(1)

    @pl.when(t == 0)
    def _():
        acc_ref[...] = jnp.zeros_like(acc_ref)

    acc_ref[...] += jnp.sum(x_ref[0].astype(jnp.float32), axis=-1, keepdims=True)

    @pl.when(t == pl.num_programs(1) - 1)
    def _():
        o_ref[0] = acc_ref[...] * inv_hw


# ----------------------------------------------------------------------------
# Pass 2: broadcast multiply  out[n, c, s] = x[n, c, s] * attn[n, c]
# ----------------------------------------------------------------------------
def _scale_kernel(x_ref, attn_ref, o_ref):
    # x_ref: (1, C, T_hw)   attn_ref: (1, C, 1) f32   o_ref: (1, C, T_hw)
    o_ref[0] = (x_ref[0].astype(jnp.float32) * attn_ref[0]).astype(o_ref.dtype)


def _round_up(x, m):
    return (x + m - 1) // m * m


def _choose_hw_tile(hw_pad128, c, dtype_bytes, target_block_bytes):
    """Largest lane-dense tile (multiple of 128) that divides the padded HW and
    keeps one (1, C, T_hw) block under the target byte budget."""
    budget_lanes = max(128, (target_block_bytes // max(1, c * dtype_bytes)) // 128 * 128)
    n128 = hw_pad128 // 128
    best = 1
    for d in range(1, n128 + 1):
        if n128 % d == 0 and d * 128 <= budget_lanes:
            best = d
    return best * 128


def multi_level_attention(x_nchw, conv_weight, gamma, beta,
                          running_mean, running_var, eps=1e-5,
                          target_block_bytes=2 << 20):
    N, C, H, W = x_nchw.shape
    C_out = conv_weight.shape[0]
    assert C_out == C, "in_channels must equal out_channels for the final mul"
    HW = H * W

    dtype = x_nchw.dtype
    dtype_bytes = jnp.dtype(dtype).itemsize

    # --- lane-dense spatial tiling (pad HW up to a multiple of 128) ------------
    hw_pad = _round_up(HW, 128)
    t_hw = _choose_hw_tile(hw_pad, C, dtype_bytes, target_block_bytes)
    n_hw_tiles = hw_pad // t_hw

    x = x_nchw.reshape(N, C, HW)
    if hw_pad != HW:
        # zero padding keeps the pooled sum exact; padded lanes are sliced off at the end
        x = jnp.pad(x, ((0, 0), (0, 0), (0, hw_pad - HW)))

    block_bytes = C * t_hw * dtype_bytes
    # 2x double-buffered input + 2x double-buffered output + f32 temps + margin
    vmem_limit = int(min(128 << 20,
                         max(16 << 20, 4 * block_bytes + 2 * C * t_hw * 4 + (4 << 20))))

    # --- pass 1: pooled mean over H*W (Pallas, tiled, f32 accumulation) --------
    pooled = pl.pallas_call(
        partial(_pool_kernel, inv_hw=1.0 / HW),
        out_shape=jax.ShapeDtypeStruct((N, C, 1), jnp.float32),
        grid_spec=pltpu.PrefetchScalarGridSpec(
            num_scalar_prefetch=0,
            grid=(N, n_hw_tiles),
            in_specs=[pl.BlockSpec((1, C, t_hw), lambda n, t: (n, 0, t))],
            out_specs=pl.BlockSpec((1, C, 1), lambda n, t: (n, 0, 0)),
            scratch_shapes=[pltpu.VMEM((C, 1), jnp.float32)],
        ),
        compiler_params=pltpu.CompilerParams(
            dimension_semantics=("parallel", "arbitrary"),
            vmem_limit_bytes=vmem_limit,
        ),
    )(x)

    # --- tiny per-sample head: 1x1 conv + BN + softmax (batched over N, XLA) ---
    w = conv_weight.reshape(C_out, C).astype(jnp.float32)
    inv_std = gamma.astype(jnp.float32) / jnp.sqrt(running_var.astype(jnp.float32) + eps)
    w_folded = inv_std[:, None] * w                                  # BN scale folded into conv
    shift = beta.astype(jnp.float32) - running_mean.astype(jnp.float32) * inv_std

    logits = pooled[:, :, 0] @ w_folded.T + shift[None, :]           # (N, C_out)
    attn = jax.nn.softmax(logits, axis=1).reshape(N, C_out, 1)       # (N, C_out, 1) f32

    # --- pass 2: streaming broadcast multiply (Pallas, lane-dense tiles) -------
    out = pl.pallas_call(
        _scale_kernel,
        out_shape=jax.ShapeDtypeStruct((N, C, hw_pad), dtype),
        grid_spec=pltpu.PrefetchScalarGridSpec(
            num_scalar_prefetch=0,
            grid=(N, n_hw_tiles),
            in_specs=[
                pl.BlockSpec((1, C, t_hw), lambda n, t: (n, 0, t)),
                pl.BlockSpec((1, C, 1), lambda n, t: (n, 0, 0)),
            ],
            out_specs=pl.BlockSpec((1, C, t_hw), lambda n, t: (n, 0, t)),
        ),
        compiler_params=pltpu.CompilerParams(
            dimension_semantics=("parallel", "parallel"),
            vmem_limit_bytes=vmem_limit,
        ),
    )(x, attn)

    if hw_pad != HW:
        out = out[:, :, :HW]
    return out.reshape(N, C, H, W)


def reference(x, conv_weight, gamma, beta, running_mean, running_var, eps=1e-5):
    # pure-JAX reference mirroring the PyTorch forward (eval-mode BN)
    N, C, H, W = x.shape
    pooled = jnp.mean(x.astype(jnp.float32), axis=(2, 3))             # (N, C)
    w = conv_weight.reshape(conv_weight.shape[0], C).astype(jnp.float32)
    conv = pooled @ w.T                                                # (N, C_out)
    bn = (conv - running_mean) / jnp.sqrt(running_var + eps) * gamma + beta
    attn = jax.nn.softmax(bn, axis=1)                                  # (N, C_out)
    return (x.astype(jnp.float32) * attn[:, :, None, None]).astype(x.dtype)


if __name__ == "__main__":
    key = jax.random.PRNGKey(0)
    kx, kw = jax.random.split(key)

    N, C, H, W = 2, 4, 16, 16
    x = jax.random.normal(kx, (N, C, H, W), dtype=jnp.float32)

    # Conv2d weight (C_out, C_in, 1, 1), kaiming_normal_ mode='fan_out', nonlinearity='sigmoid'
    # fan_out = C_out * 1 * 1, gain(sigmoid) = 1  ->  std = 1 / sqrt(C_out)
    std = 1.0 / jnp.sqrt(jnp.float32(C))
    conv_weight = std * jax.random.normal(kw, (C, C, 1, 1), dtype=jnp.float32)

    # BatchNorm2d params per module __init__; running stats at defaults
    gamma = jnp.ones((C,), jnp.float32)
    beta = jnp.zeros((C,), jnp.float32)
    running_mean = jnp.zeros((C,), jnp.float32)
    running_var = jnp.ones((C,), jnp.float32)

    y = multi_level_attention(x, conv_weight, gamma, beta, running_mean, running_var)
    y = jax.block_until_ready(y)

    y_ref = reference(x, conv_weight, gamma, beta, running_mean, running_var)
    assert y.shape == (N, C, H, W)
    assert jnp.allclose(y, y_ref, atol=1e-5, rtol=1e-5), "mismatch vs reference"

    print("KERNEL_OK")
</pallas_src>

<mosaic_0001>
module attributes {stable_mosaic.version = 11 : i64} {
  func.func @_pool_kernel(%arg0: i32, %arg1: i32, %arg2: memref<1x4x256xf32, #tpu.memory_space<vmem>>, %arg3: memref<1x4x1xf32, #tpu.memory_space<vmem>>, %arg4: memref<4x1xf32, #tpu.memory_space<vmem>>) attributes {dimension_semantics = [#tpu.dimension_semantics<parallel>, #tpu.dimension_semantics<arbitrary>], iteration_bounds = array<i64: 2, 1>, scalar_prefetch = 0 : i64, scratch_operands = 1 : i64, tpu.core_type = #tpu.core_type<tc>, window_params = [{transform_indices = @transform_0, window_bounds = array<i64: 1, 4, 256>}, {transform_indices = @transform_1, window_bounds = array<i64: 1, 4, 1>}]} {
    %c0_i32 = arith.constant 0 : i32
    %0 = arith.cmpi eq, %arg1, %c0_i32 : i32
    %1 = arith.extui %0 : i1 to i32
    %c0_i32_0 = arith.constant 0 : i32
    %2 = arith.cmpi ne, %1, %c0_i32_0 : i32
    scf.if %2 {
      %cst_9 = arith.constant 0.000000e+00 : f32
      %13 = vector.broadcast %cst_9 : f32 to vector<4x1xf32>
      %c0_10 = arith.constant 0 : index
      %c0_11 = arith.constant 0 : index
      %14 = vector.load %arg4[%c0_10, %c0_11] : memref<4x1xf32, #tpu.memory_space<vmem>>, vector<4x1xf32>
      tpu.vector_store %arg4[%c0_10, %c0_11], %13 {strides = array<i32>} : memref<4x1xf32, #tpu.memory_space<vmem>>, vector<4x1xf32>,
    } else {
    }
    %c0 = arith.constant 0 : index
    %c0_1 = arith.constant 0 : index
    %3 = vector.load %arg4[%c0, %c0_1] : memref<4x1xf32, #tpu.memory_space<vmem>>, vector<4x1xf32>
    %c0_2 = arith.constant 0 : index
    %c0_3 = arith.constant 0 : index
    %c0_4 = arith.constant 0 : index
    %4 = vector.load %arg2[%c0_2, %c0_3, %c0_4] : memref<1x4x256xf32, #tpu.memory_space<vmem>>, vector<1x4x256xf32>
    %5 = vector.shape_cast %4 : vector<1x4x256xf32> to vector<4x256xf32>
    %cst = arith.constant dense<0.000000e+00> : vector<4xf32>
    %6 = vector.multi_reduction <add>, %5, %cst [1] : vector<4x256xf32> to vector<4xf32>
    %7 = vector.shape_cast %6 : vector<4xf32> to vector<4x1xf32>
    %8 = arith.addf %3, %7 : vector<4x1xf32>
    %c0_5 = arith.constant 0 : index
    %c0_6 = arith.constant 0 : index
    %9 = vector.load %arg4[%c0_5, %c0_6] : memref<4x1xf32, #tpu.memory_space<vmem>>, vector<4x1xf32>
    tpu.vector_store %arg4[%c0_5, %c0_6], %8 {strides = array<i32>} : memref<4x1xf32, #tpu.memory_space<vmem>>, vector<4x1xf32>,
    %c0_i32_7 = arith.constant 0 : i32
    %10 = arith.cmpi eq, %arg1, %c0_i32_7 : i32
    %11 = arith.extui %10 : i1 to i32
    %c0_i32_8 = arith.constant 0 : i32
    %12 = arith.cmpi ne, %11, %c0_i32_8 : i32
    scf.if %12 {
      %c0_9 = arith.constant 0 : index
      %c0_10 = arith.constant 0 : index
      %13 = vector.load %arg4[%c0_9, %c0_10] : memref<4x1xf32, #tpu.memory_space<vmem>>, vector<4x1xf32>
      %cst_11 = arith.constant 3.906250e-03 : f32
      %14 = vector.broadcast %cst_11 : f32 to vector<4x1xf32>
      %15 = arith.mulf %13, %14 : vector<4x1xf32>
      %c0_12 = arith.constant 0 : index
      %c0_13 = arith.constant 0 : index
      %c0_14 = arith.constant 0 : index
      %16 = vector.load %arg3[%c0_12, %c0_13, %c0_14] : memref<1x4x1xf32, #tpu.memory_space<vmem>>, vector<1x4x1xf32>
      %17 = vector.shape_cast %16 : vector<1x4x1xf32> to vector<4x1xf32>
      %18 = vector.shape_cast %15 : vector<4x1xf32> to vector<1x4x1xf32>
      tpu.vector_store %arg3[%c0_12, %c0_13, %c0_14], %18 {strides = array<i32>} : memref<1x4x1xf32, #tpu.memory_space<vmem>>, vector<1x4x1xf32>,
    } else {
    }
    return
  }
  func.func @transform_0(%arg0: i32, %arg1: i32) -> (i32, i32, i32) {
    %c0_i32 = arith.constant 0 : i32
    %c0_i32_0 = arith.constant 0 : i32
    return %arg0, %c0_i32, %arg1 : i32, i32, i32
  }
  func.func @transform_1(%arg0: i32, %arg1: i32) -> (i32, i32, i32) {
    %c0_i32 = arith.constant 0 : i32
    %c0_i32_0 = arith.constant 0 : i32
    %c0_i32_1 = arith.constant 0 : i32
    return %arg0, %c0_i32, %c0_i32_0 : i32, i32, i32
  }
}

</mosaic_0001>

<bundles_post_ra>
// kernel: tpu_custom_call.1
= control target key start
LH: loop header
LB: loop body
LE: loop exit
PB: predicated region body
PF: predicated region fallthrough
CT: control target
= control target key end

     0   :  { %6 = vsyncpa [#allocation4], 0  ;;  %s544_s0 = inlined_call_operand.hbm [shape: f32[2,4,256], index: 0, kind: input, shape index: {}]   ;;  %s545_s1 = inlined_call_operand.vmem [shape: f32[2,4,1], index: 1, kind: output, shape index: {}]  }
   0x1   :  { %8 = vsyncpa [#allocation4 + $0x1], 0  ;;  %s416_s6 = smov 0   ;;  %s418_s7 = smov 0  }
   0x2   :  { %s420_s8 = smov 0   ;;  %s422_s9 = smov 0  }
   0x3   :  { %s424_s10 = smov 0   ;;  %s426_s11 = smov 0  }
   0x4 LB: > { %s252_s12 = sadd.s32 4294967295, %s402_s11   ;;  %s26_s13 = sadd.s32 1, %s398_s10  ;;  %s402_s11 = sphi %s426_s11, %s14_s11   ;;  %s398_s10 = sphi %s424_s10, %s555_s10   ;;  %s394_s9 = sphi %s422_s9, %s554_s9   ;;  %s390_s8 = sphi %s420_s8, %s553_s8   ;;  %s386_s7 = sphi %s418_s7, %s552_s7   ;;  %s382_s6 = sphi %s416_s6, %s551_s6  }
   0x5   : > { %p28_p0 = scmp.ge.s32.totalorder %s26_s13, 2  ;;  %s35_s14 = sadd.s32 1, %s390_s8 }
   0x6   : > { %p42_p1 = scmp.ne.s32.totalorder %s390_s8, %s386_s7  ;;  %p43_p2 = scmp.eq.s32.totalorder %s402_s11, 0 }
   0x7   : > { %s557_s13 = smov (%p28_p0, %s26_s13), 0  ;;  %p48_p4 = scmp.ne.s32.totalorder %s386_s7, %s382_s6 }
   0x8   : > { %p452_p3 = por %p43_p2, %p42_p1  ;;  %s30_s16 = ssub.s32 %s398_s10, %s557_s13 }
   0x9   : > { %p49_p5 = scmp.eq.s32.totalorder %s252_s12, 0  ;;  %p33_p6 = scmp.eq.s32.totalorder %s30_s16, 0 }
   0xa   : > { %p271_p8 = scmp.lt.s32.totalorder %s402_s11, 2  ;;  %s98_s19 = sand.u32 1, %s390_s8  }
   0xb   : > { %p459_p7 = por %p49_p5, %p48_p4  ;;  %s264_s20 = sshll.u32 %s398_s10, 7 }
   0xc   : > { %s465_s18 = scalar_select %p33_p6, %s390_s8, %s35_s14  }
   0xd   : > { %s256_s21 = sshll.u32 %s98_s19, 3  ;;  %s472_s24 = scalar_lea.hbm %s544_s0, %s264_s20 }
   0xe   : > { %s102_s25 = scalar_lea.vmem [#allocation3], %s256_s21  ;;  %p476_p9 = pnand %p271_p8, %p452_p3 }
   0xf   : > { %s112_s26 = sshll.u32 %s102_s25, 4  ;;  %s99_s28 = scalar_lea.sflag [#allocation4], %s98_s19  ;;  %s480_s26 = int_to_ptr.vmem [resolvable:$true] %s112_s26 }
  0x10   : > { %s322_s29 = scalar_lea.hbm %s472_s24, 128  ;;  %p324_p13 = pneg %p476_p9 }
  0x11   : > { %p323_p12 = scmp.ne.s32.totalorder %s472_s24, %s322_s29  ;;  %s327_s3 = scalar_lea.hbm %s544_s0, 256 }
  0x12   : > { %p328_p2 = scmp.lt.u32.totalorder %s472_s24, %s544_s0  ;;  %p329_p3 = scmp.lt.u32.totalorder %s327_s3, %s322_s29 }
  0x13   : > { %p325_p0 = pnand %p324_p13, %p323_p12  ;;  %p331_p5 = scmp.lt.u32.totalorder %s322_s29, %s472_s24 }
  0x14   : > { %p330_p4 = por %p329_p3, %p328_p2 }
  0x15   : > { %p326_p1 = pneg %p325_p0 }
  0x16   : > { %p332_p6 = por %p331_p5, %p330_p4 }
  0x18   : > { %p333_p8 = pnand %p332_p6, %p326_p1 }
  0x1a   : > { %336 = shalt.err (!%p333_p8)
}
  0x1b   : > { %s337_s6 = scalar_lea.vmem %s480_s26, 128  ;;  %s404_s12 = smov [#allocation3]  }
  0x1c   : > { %p338_p12 = scmp.ne.s32.totalorder %s480_s26, %s337_s6  ;;  %s342_s14 = sshll.u32 %s404_s12, 4  ;;  %s343_s14 = int_to_ptr.vmem [resolvable:$false] %s342_s14 }
  0x1d   : > { %s344_s15 = scalar_lea.vmem %s343_s14, 256  ;;  %p345_p11 = scmp.lt.s32.totalorder %s480_s26, %s343_s14 }
  0x1e   : > { %p340_p0 = pnand %p338_p12, %p324_p13  ;;  %p346_p2 = scmp.lt.s32.totalorder %s344_s15, %s337_s6 }
  0x20   : > { %p341_p10 = pneg %p340_p0  ;;  %p347_p3 = por %p346_p2, %p345_p11 }
  0x22   : > { %p348_p4 = pnand %p347_p3, %p341_p10 }
  0x24   : > { %351 = shalt.err (!%p348_p4)
}
  0x25   : > { %270 = dma.hbm_to_vmem [thread:$0]  (!%p476_p9), %s472_s24, 128, %s480_s26, %s99_s28  }
  0x26   : > { %p549_p1 = scmp.lt.s32.totalorder %s402_s11, 3  ;;  %p550_p5 = scmp.ge.s32.totalorder %s402_s11, 1 }
  0x28   : > { %p118_p13 = pnand %p550_p5, %p549_p1 }
  0x29   : > { %s123_s16 = sand.u32 (!%p118_p13), 1, %s386_s7  }
  0x2a   : > { %121 = sbr.rel (%p118_p13) target bundleno = 211 (0xd3), region = 24  ;;  %s260_s19 = sshll.u32 (!%p118_p13), %s123_s16, 3 }
  0x2b   : > { %s124_s20 = scalar_lea.sflag (!%p118_p13), [#allocation4], %s123_s16  ;;  %s127_s21 = scalar_lea.vmem (!%p118_p13), [#allocation3], %s260_s19 }
  0x31   : > { %377 = dma.done.wait (%p459_p7), %s124_s20, 128  }
  0x32   : > { %379 = vsyncadd (%p459_p7), %s124_s20, 4294967168  ;;  %vm154_vm0 = vcmask 3072   ;;  %v405_v0 = vmov 0.0   ;;  %vm161_vm1 = vcmask 1043456   ;;  %v157_v1 = vld [vmem:[%s127_s21] sm:$0xff]  ;;  %p146_p9 = scmp.lt.s32.totalorder %s394_s9, 1 }
  0x33   : > { %155 = vst.msk [vmem:[#allocation2] sm:$0xf] %vm154_vm0, %v405_v0  ;;  %v159_v2 = vcombine.high %v157_v1, %v157_v1  ;;  %v162_v3 = vsel %vm161_vm1, %v157_v1, 0.0 }
  0x34   : > { %s559_s9 = smov (!%p146_p9, %s394_s9), 1 }
  0x35   : > { %v163_v4 = vsel %vm161_vm1, %v159_v2, 0.0  ;;  %s261_s17 = sshll.u32 %s559_s9, 2 }
  0x36   : > { %v164_v5 = vadd.f32 %v163_v4, %v162_v3  ;;  %s149_s24 = scalar_lea.vmem %s545_s1, %s261_s17 }
  0x38   : > { %165 = vadd.xlane.f32.xlu0 %v164_v5 }
  0x3a   : > { %v156_v6 = vld [vmem:[#allocation2] sm:$0xf] }
  0xc5   : > { %v166_v7 = vpop.xlane.xlu0 %165 }
  0xc6   : > { %v167_v8 = vadd.f32 %v166_v7, %v156_v6 }
  0xc8   : > { %169 = vst.msk [vmem:[#allocation2] sm:$0xf] %vm154_vm0, %v167_v8 }
  0xcf   : > { %v173_v9 = vld [vmem:[#allocation2] sm:$0xf] }
  0xd0   : > { %v174_v10 = vmul.f32 0.00390625, %v173_v9 }
  0xd2   : > { %175 = vst.msk [vmem:[%s149_s24] sm:$0xf] %vm154_vm0, %v174_v10 }
  0xd3 PF: > { %s14_s11 = sadd.s32 1, %s402_s11   ;;  %s551_s6 = smov %s386_s7 }
  0xd4   : > { %p11_p7 = scmp.ge.s32.totalorder %s14_s11, 4   ;;  %s552_s7 = smov %s390_s8 }
  0xd5   : > { %s553_s8 = smov %s465_s18  ;;  %s554_s9 = smov %s398_s10 }
  0xd6   : > { %s555_s10 = smov %s557_s13  ;;  %13 = sbr.rel (!%p11_p7) target bundleno = 4 (0x4), region = 72 }
  0xdd   :  { %195 = vsyncpa [#allocation4], 1 }
  0xde   :  { %197 = vsyncpa [#allocation4 + $0x1], 1 }

</bundles_post_ra>
